<compile_context>
chip_gen: v7x
topology: tpu7x:2x2x1
jax: 0.10.0
libtpu: 0.0.40
codegen_flags: <defaults>
</compile_context>

<pallas_src>
import jax
import jax.numpy as jnp
from jax.experimental import pallas as pl
from jax.experimental.pallas import tpu as pltpu


def _round_up(x, m):
    return (x + m - 1) // m * m


def _cdiv(a, b):
    return -(-a // b)


def _vmem_capacity_bytes():
    """Per-TensorCore VMEM capacity; conservative v7x fallback if unknown."""
    try:
        info = pltpu.get_tpu_info()
        cap = getattr(info, "vmem_capacity_bytes", None)
        if cap:
            return int(cap)
    except Exception:
        pass
    return 64 * 1024 * 1024


def _working_set_bytes(tb, ts, s_pad, d_pad, e_pad, mxu_item, tanh_item):
    """Estimate of the per-step VMEM working set (inputs, f32 temps, outputs)."""
    enc_blk = 2 * tb * ts * e_pad * mxu_item          # double-buffered enc block
    h_blk = 2 * tb * d_pad * mxu_item                 # double-buffered hidden block
    weights = (d_pad + e_pad) * d_pad * mxu_item + d_pad * 4
    # e_proj (f32) + pre-activation (f32) + z (tanh dtype) + score/p temps
    interm = tb * ts * d_pad * (4 + 4 + tanh_item) + 4 * tb * ts * 4
    outs = 2 * (tb * s_pad * 4 + tb * e_pad * 4)      # resident att + ctx blocks
    scratch = tb * e_pad * 4 + 2 * tb * 128 * 4       # acc + m/l scratch (lane-padded)
    return enc_blk + h_blk + weights + interm + outs + scratch


def _make_kernel(S, s_pad, tb, ts, n_s, tanh_dtype):
    def kernel(h_ref, enc_ref, wh_t_ref, we_t_ref, va_ref,
               att_ref, ctx_ref, m_sc, l_sc, acc_sc):
        # h_ref   : (tb, d_pad)        hidden states (mxu dtype)
        # enc_ref : (tb, ts, e_pad)    encoder block for this (i, j) step
        # wh_t_ref: (d_pad, d_pad)     Wa[:, :D]^T  (hidden half, zero-padded)
        # we_t_ref: (e_pad, d_pad)     Wa[:, D:]^T  (encoder half, zero-padded)
        # va_ref  : (1, d_pad)         Va row, f32, zero-padded
        # att_ref : (tb, s_pad) f32    resident across the S axis
        # ctx_ref : (tb, e_pad) f32    resident across the S axis
        # m_sc/l_sc/acc_sc             online-softmax scratch (used when n_s > 1)
        d_pad = h_ref.shape[-1]
        e_pad = enc_ref.shape[-1]
        j = pl.program_id(1)

        enc3 = enc_ref[...]                                   # (tb, ts, e_pad)
        # ts is a multiple of 8 -> merging the leading dims is tile-aligned.
        enc2 = enc3.reshape(tb * ts, e_pad)

        # Projections on the MXU with f32 accumulation (M = tb*ts rows).
        h_proj = jnp.dot(h_ref[...], wh_t_ref[...],
                         preferred_element_type=jnp.float32)  # (tb, d_pad)
        e_proj = jnp.dot(enc2, we_t_ref[...],
                         preferred_element_type=jnp.float32)  # (tb*ts, d_pad)

        pre = e_proj.reshape(tb, ts, d_pad) + h_proj[:, None, :]
        z = jnp.tanh(pre.astype(tanh_dtype))                  # bf16 tanh on bf16 path

        # Scores: VPU multiply + lane reduction (f32), no width-1 MXU matmul.
        va = va_ref[...].astype(jnp.float32)                  # (1, d_pad)
        scores = jnp.sum(z * va[None, :, :], axis=-1)         # (tb, ts) f32

        if s_pad > S:  # mask padded sequence positions (only the last S block)
            col = j * ts + jax.lax.broadcasted_iota(jnp.int32, (tb, ts), 1)
            scores = jnp.where(col < S, scores, -jnp.inf)

        if n_s == 1:
            # Single-pass softmax along the lane axis; transpose-free stores.
            m = jnp.max(scores, axis=-1, keepdims=True)
            e = jnp.exp(scores - m)
            denom = jnp.sum(e, axis=-1, keepdims=True)
            w = e * pl.reciprocal(denom, approx=True)          # (tb, ts)
            att_ref[...] = w
            ctx_ref[...] = jnp.einsum(
                "bqs,bse->bqe", w[:, None, :].astype(enc3.dtype), enc3,
                preferred_element_type=jnp.float32)[:, 0, :]
        else:
            # Online softmax across S blocks; context accumulator in scratch.
            @pl.when(j == 0)
            def _():
                m_sc[...] = jnp.full_like(m_sc, -jnp.inf)
                l_sc[...] = jnp.zeros_like(l_sc)
                acc_sc[...] = jnp.zeros_like(acc_sc)

            # Stash raw scores in the resident att block for the final pass.
            off = pl.multiple_of(j * ts, 8)
            att_ref[:, pl.ds(off, ts)] = scores

            m_prev = m_sc[...]
            m_new = jnp.maximum(m_prev, jnp.max(scores, axis=-1, keepdims=True))
            alpha = jnp.exp(m_prev - m_new)
            p = jnp.exp(scores - m_new)                        # (tb, ts)
            l_sc[...] = alpha * l_sc[...] + jnp.sum(p, axis=-1, keepdims=True)
            acc_sc[...] = alpha * acc_sc[...] + jnp.einsum(
                "bqs,bse->bqe", p[:, None, :].astype(enc3.dtype), enc3,
                preferred_element_type=jnp.float32)[:, 0, :]
            m_sc[...] = m_new

            @pl.when(j == n_s - 1)
            def _():
                inv_l = pl.reciprocal(l_sc[...], approx=True)  # (tb, 1)
                att_ref[...] = jnp.exp(att_ref[...] - m_sc[...]) * inv_l
                ctx_ref[...] = acc_sc[...] * inv_l

    return kernel


def attention_concat_global(hidden_state, encoder_outputs, wa_weight, va_weight,
                            va_bias=None, *, mxu_dtype=jnp.bfloat16,
                            tanh_dtype=None, tb=None, ts=None):
    """
    hidden_state    : (B, Ddec)  float32
    encoder_outputs : (B, S, E)  float32
    wa_weight       : (Ddec, E + Ddec)  nn.Linear weight (out, in), no bias
    va_weight       : (1, Ddec)
    va_bias         : (1,)  -- accepted but unused: a per-row constant cancels in
                              the softmax, so weights and context are exact.
    mxu_dtype       : dtype of the MXU inputs (enc/hidden/Wa halves).  bf16 is the
                      default everywhere (mem-bound win); float32 for exactness.
    tanh_dtype      : dtype of the tanh pre-activation; defaults to mxu_dtype.
    returns (attention_weight (B, S), context (B, E))  both float32
    """
    B, Ddec = hidden_state.shape
    _, S, E = encoder_outputs.shape

    mxu_dtype = jnp.dtype(mxu_dtype)
    tanh_dtype = jnp.dtype(mxu_dtype if tanh_dtype is None else tanh_dtype)

    d_pad = _round_up(Ddec, 128)
    e_pad = _round_up(E, 128)
    s_pad0 = _round_up(S, 8)

    # ---- generation-aware VMEM budget -----------------------------------
    vmem_cap = _vmem_capacity_bytes()               # 64 MiB v7x, 128 MiB v5e/v6e
    vmem_limit = max(32 * 1024 * 1024, min(vmem_cap * 3 // 4, 96 * 1024 * 1024))
    budget = int(vmem_limit * 0.8)

    mxu_item = mxu_dtype.itemsize
    tanh_item = tanh_dtype.itemsize

    # ---- batch block -----------------------------------------------------
    b8 = _round_up(B, 8)
    if tb is None:
        tb = min(128, b8)
        if B >= 16:
            # >= 2 batch-grid steps so both v7x TensorCores get work
            tb = min(tb, _round_up(_cdiv(b8, 2), 8))
    tb = max(8, _round_up(int(tb), 8))

    # ---- sequence block (online softmax once a single block no longer fits)
    def s_plan(n_target):
        ts_ = _round_up(_cdiv(s_pad0, n_target), 8)
        n_ = _cdiv(s_pad0, ts_)
        return ts_, n_, n_ * ts_

    if ts is None:
        n_target = 1
        ts, n_s, s_pad = s_plan(n_target)
        while ts > 8 and _working_set_bytes(tb, ts, s_pad, d_pad, e_pad,
                                            mxu_item, tanh_item) > budget:
            n_target += 1
            ts, n_s, s_pad = s_plan(n_target)
    else:
        ts = min(max(8, _round_up(int(ts), 8)), s_pad0)
        n_s = _cdiv(s_pad0, ts)
        s_pad = n_s * ts

    # If still over budget, shrink the batch block.
    while tb > 8 and _working_set_bytes(tb, ts, s_pad, d_pad, e_pad,
                                        mxu_item, tanh_item) > budget:
        tb -= 8

    b_pad = _round_up(B, tb)

    # ---- weights: split / transpose / zero-pad (concat order: [hidden, enc])
    wa = wa_weight
    wh_t = jnp.zeros((d_pad, d_pad), mxu_dtype).at[:Ddec, :Ddec].set(
        wa[:, :Ddec].T.astype(mxu_dtype))
    we_t = jnp.zeros((e_pad, d_pad), mxu_dtype).at[:E, :Ddec].set(
        wa[:, Ddec:].T.astype(mxu_dtype))
    va_row = jnp.zeros((1, d_pad), jnp.float32).at[:, :Ddec].set(
        va_weight.astype(jnp.float32))

    # ---- activations: build directly in mxu_dtype; skip the pad when aligned
    if B == b_pad and Ddec == d_pad:
        h_p = hidden_state.astype(mxu_dtype)
    else:
        h_p = jnp.zeros((b_pad, d_pad), mxu_dtype).at[:B, :Ddec].set(
            hidden_state.astype(mxu_dtype))
    if B == b_pad and S == s_pad and E == e_pad:
        enc_p = encoder_outputs.astype(mxu_dtype)
    else:
        enc_p = jnp.zeros((b_pad, s_pad, e_pad), mxu_dtype).at[:B, :S, :E].set(
            encoder_outputs.astype(mxu_dtype))

    kernel = _make_kernel(S, s_pad, tb, ts, n_s, tanh_dtype)

    att_p, ctx_p = pl.pallas_call(
        kernel,
        out_shape=(
            jax.ShapeDtypeStruct((b_pad, s_pad), jnp.float32),
            jax.ShapeDtypeStruct((b_pad, e_pad), jnp.float32),
        ),
        grid_spec=pltpu.PrefetchScalarGridSpec(
            num_scalar_prefetch=0,
            grid=(b_pad // tb, n_s),
            in_specs=[
                pl.BlockSpec((tb, d_pad), lambda i, j: (i, 0)),
                pl.BlockSpec((tb, ts, e_pad), lambda i, j: (i, j, 0)),
                pl.BlockSpec((d_pad, d_pad), lambda i, j: (0, 0)),
                pl.BlockSpec((e_pad, d_pad), lambda i, j: (0, 0)),
                pl.BlockSpec((1, d_pad), lambda i, j: (0, 0)),
            ],
            out_specs=[
                pl.BlockSpec((tb, s_pad), lambda i, j: (i, 0)),   # resident over j
                pl.BlockSpec((tb, e_pad), lambda i, j: (i, 0)),   # resident over j
            ],
            scratch_shapes=[
                pltpu.VMEM((tb, 1), jnp.float32),      # running max
                pltpu.VMEM((tb, 1), jnp.float32),      # running denom
                pltpu.VMEM((tb, e_pad), jnp.float32),  # context accumulator
            ],
        ),
        compiler_params=pltpu.CompilerParams(
            dimension_semantics=("parallel", "arbitrary"),
            vmem_limit_bytes=int(vmem_limit),
        ),
    )(h_p, enc_p, wh_t, we_t, va_row)

    return att_p[:B, :S], ctx_p[:B, :E]


def _reference(hidden_state, encoder_outputs, wa_weight, va_weight, va_bias):
    B, S, E = encoder_outputs.shape
    D = hidden_state.shape[-1]
    h_rep = jnp.broadcast_to(hidden_state[:, None, :], (B, S, D))
    concat = jnp.concatenate([h_rep, encoder_outputs], axis=-1)     # (B, S, D+E)
    z = jnp.tanh(concat @ wa_weight.T)                              # (B, S, D)
    scores = (z @ va_weight.T)[..., 0] + va_bias[0]                 # (B, S)
    w = jax.nn.softmax(scores, axis=1)
    ctx = jnp.sum(encoder_outputs * w[..., None], axis=1)           # (B, E)
    return w, ctx


if __name__ == "__main__":
    key = jax.random.PRNGKey(0)

    def make_inputs(k, B, S, E, D):
        k1, k2, k3, k4, k5 = jax.random.split(k, 5)
        hidden = jax.random.normal(k1, (B, D), jnp.float32)
        enc = jax.random.normal(k2, (B, S, E), jnp.float32)
        wa = jax.random.normal(k3, (D, E + D), jnp.float32) * 0.1
        va = jax.random.normal(k4, (1, D), jnp.float32) * 0.1
        vb = jax.random.normal(k5, (1,), jnp.float32) * 0.1
        return hidden, enc, wa, va, vb

    k1, k2, k3 = jax.random.split(key, 3)

    # Case 1: tiny module-scale shapes, exact f32 path, single S block.
    h, enc, wa, va, vb = make_inputs(k1, B=2, S=8, E=32, D=32)
    att, ctx = attention_concat_global(h, enc, wa, va, vb, mxu_dtype=jnp.float32)
    jax.block_until_ready((att, ctx))
    att_r, ctx_r = _reference(h, enc, wa, va, vb)
    assert jnp.allclose(att, att_r, atol=3e-3, rtol=3e-3), "attention mismatch (f32)"
    assert jnp.allclose(ctx, ctx_r, atol=3e-3, rtol=3e-3), "context mismatch (f32)"

    # Case 2: unaligned dims (padding + masking), 2-step batch grid (megacore),
    # default bf16 MXU inputs + bf16 tanh.
    h, enc, wa, va, vb = make_inputs(k2, B=20, S=70, E=48, D=40)
    att, ctx = attention_concat_global(h, enc, wa, va, vb)          # bf16 default
    jax.block_until_ready((att, ctx))
    att_r, ctx_r = _reference(h, enc, wa, va, vb)
    assert jnp.allclose(att, att_r, atol=3e-2, rtol=3e-2), "attention mismatch (bf16)"
    assert jnp.allclose(ctx, ctx_r, atol=3e-2, rtol=3e-2), "context mismatch (bf16)"

    # Case 3: forced S tiling (ts=16 over S=40) -> exercises the online-softmax /
    # context-accumulator path, f32 for tight tolerance.
    h, enc, wa, va, vb = make_inputs(k3, B=4, S=40, E=64, D=48)
    att, ctx = attention_concat_global(h, enc, wa, va, vb,
                                       mxu_dtype=jnp.float32, tb=8, ts=16)
    jax.block_until_ready((att, ctx))
    att_r, ctx_r = _reference(h, enc, wa, va, vb)
    assert jnp.allclose(att, att_r, atol=3e-3, rtol=3e-3), "attention mismatch (online)"
    assert jnp.allclose(ctx, ctx_r, atol=3e-3, rtol=3e-3), "context mismatch (online)"

    # TODO(synk): 'dot', 'general', and 'local' branches of the module are not
    # implemented; the module's default config (concat/global) is covered.
    print("KERNEL_OK")
</pallas_src>

<mosaic_0001>
module attributes {stable_mosaic.version = 11 : i64} {
  func.func @kernel(%arg0: i32, %arg1: i32, %arg2: memref<8x128xf32, #tpu.memory_space<vmem>>, %arg3: memref<8x8x128xf32, #tpu.memory_space<vmem>>, %arg4: memref<128x128xf32, #tpu.memory_space<vmem>>, %arg5: memref<128x128xf32, #tpu.memory_space<vmem>>, %arg6: memref<1x128xf32, #tpu.memory_space<vmem>>, %arg7: memref<8x8xf32, #tpu.memory_space<vmem>>, %arg8: memref<8x128xf32, #tpu.memory_space<vmem>>, %arg9: memref<8x1xf32, #tpu.memory_space<vmem>>, %arg10: memref<8x1xf32, #tpu.memory_space<vmem>>, %arg11: memref<8x128xf32, #tpu.memory_space<vmem>>) attributes {dimension_semantics = [#tpu.dimension_semantics<parallel>, #tpu.dimension_semantics<arbitrary>], iteration_bounds = array<i64: 1, 1>, scalar_prefetch = 0 : i64, scratch_operands = 3 : i64, tpu.core_type = #tpu.core_type<tc>, window_params = [{transform_indices = @transform_0, window_bounds = array<i64: 8, 128>}, {transform_indices = @transform_1, window_bounds = array<i64: 8, 8, 128>}, {pipeline_mode = #tpu.pipeline_mode<synchronous>, transform_indices = @transform_2, window_bounds = array<i64: 128, 128>}, {pipeline_mode = #tpu.pipeline_mode<synchronous>, transform_indices = @transform_3, window_bounds = array<i64: 128, 128>}, {pipeline_mode = #tpu.pipeline_mode<synchronous>, transform_indices = @transform_4, window_bounds = array<i64: 1, 128>}, {transform_indices = @transform_5, window_bounds = array<i64: 8, 8>}, {transform_indices = @transform_6, window_bounds = array<i64: 8, 128>}]} {
    %c0 = arith.constant 0 : index
    %c0_0 = arith.constant 0 : index
    %c0_1 = arith.constant 0 : index
    %0 = vector.load %arg3[%c0, %c0_0, %c0_1] : memref<8x8x128xf32, #tpu.memory_space<vmem>>, vector<8x8x128xf32>
    %1 = vector.shape_cast %0 : vector<8x8x128xf32> to vector<64x128xf32>
    %c0_2 = arith.constant 0 : index
    %c0_3 = arith.constant 0 : index
    %2 = vector.load %arg2[%c0_2, %c0_3] : memref<8x128xf32, #tpu.memory_space<vmem>>, vector<8x128xf32>
    %c0_4 = arith.constant 0 : index
    %c0_5 = arith.constant 0 : index
    %3 = vector.load %arg4[%c0_4, %c0_5] : memref<128x128xf32, #tpu.memory_space<vmem>>, vector<128x128xf32>
    %cst = arith.constant dense<0.000000e+00> : vector<8x128xf32>
    %4 = tpu.matmul %2, %3, %cst {dimension_numbers = #tpu.dot_dimension_numbers<[1], [0], [0], [1], [0, 0, 1, 1], [], []>} : vector<8x128xf32>, vector<128x128xf32>, vector<8x128xf32> -> vector<8x128xf32>
    %c0_6 = arith.constant 0 : index
    %c0_7 = arith.constant 0 : index
    %5 = vector.load %arg5[%c0_6, %c0_7] : memref<128x128xf32, #tpu.memory_space<vmem>>, vector<128x128xf32>
    %cst_8 = arith.constant dense<0.000000e+00> : vector<64x128xf32>
    %6 = tpu.matmul %1, %5, %cst_8 {dimension_numbers = #tpu.dot_dimension_numbers<[1], [0], [0], [1], [0, 0, 1, 1], [], []>} : vector<64x128xf32>, vector<128x128xf32>, vector<64x128xf32> -> vector<64x128xf32>
    %7 = vector.shape_cast %6 : vector<64x128xf32> to vector<8x8x128xf32>
    %8 = vector.shape_cast %4 : vector<8x128xf32> to vector<8x1x128xf32>
    %9 = vector.broadcast %8 : vector<8x1x128xf32> to vector<8x8x128xf32>
    %10 = arith.addf %7, %9 : vector<8x8x128xf32>
    %11 = math.tanh %10 : vector<8x8x128xf32>
    %c0_9 = arith.constant 0 : index
    %c0_10 = arith.constant 0 : index
    %12 = vector.load %arg6[%c0_9, %c0_10] : memref<1x128xf32, #tpu.memory_space<vmem>>, vector<1x128xf32>
    %13 = vector.shape_cast %12 : vector<1x128xf32> to vector<1x1x128xf32>
    %14 = vector.broadcast %13 : vector<1x1x128xf32> to vector<8x8x128xf32>
    %15 = arith.mulf %11, %14 : vector<8x8x128xf32>
    %cst_11 = arith.constant dense<0.000000e+00> : vector<8x8xf32>
    %16 = vector.multi_reduction <add>, %15, %cst_11 [2] : vector<8x8x128xf32> to vector<8x8xf32>
    %cst_12 = arith.constant dense<0xFF800000> : vector<8xf32>
    %17 = vector.multi_reduction <maximumf>, %16, %cst_12 [1] : vector<8x8xf32> to vector<8xf32>
    %18 = vector.shape_cast %17 : vector<8xf32> to vector<8x1xf32>
    %19 = vector.broadcast %18 : vector<8x1xf32> to vector<8x8xf32>
    %20 = arith.subf %16, %19 : vector<8x8xf32>
    %21 = math.exp %20 : vector<8x8xf32>
    %cst_13 = arith.constant dense<0.000000e+00> : vector<8xf32>
    %22 = vector.multi_reduction <add>, %21, %cst_13 [1] : vector<8x8xf32> to vector<8xf32>
    %23 = vector.shape_cast %22 : vector<8xf32> to vector<8x1xf32>
    %24 = tpu.reciprocal %23 {approx = true} : vector<8x1xf32> -> vector<8x1xf32>
    %25 = vector.broadcast %24 : vector<8x1xf32> to vector<8x8xf32>
    %26 = arith.mulf %21, %25 : vector<8x8xf32>
    %c0_14 = arith.constant 0 : index
    %c0_15 = arith.constant 0 : index
    %27 = vector.load %arg7[%c0_14, %c0_15] : memref<8x8xf32, #tpu.memory_space<vmem>>, vector<8x8xf32>
    tpu.vector_store %arg7[%c0_14, %c0_15], %26 {strides = array<i32>} : memref<8x8xf32, #tpu.memory_space<vmem>>, vector<8x8xf32>,
    %28 = vector.shape_cast %26 : vector<8x8xf32> to vector<8x1x8xf32>
    "tpu.trace_start"() <{level = 10 : i32, message = "bqs,bse->bqe"}> : () -> ()
    %cst_16 = arith.constant dense<0.000000e+00> : vector<8x1x128xf32>
    %29 = tpu.matmul %28, %0, %cst_16 {dimension_numbers = #tpu.dot_dimension_numbers<[2], [1], [1], [2], [0, 0, 0, 1, 1, 2], [0], [0]>} : vector<8x1x8xf32>, vector<8x8x128xf32>, vector<8x1x128xf32> -> vector<8x1x128xf32>
    "tpu.trace_stop"() : () -> ()
    %30 = vector.shape_cast %29 : vector<8x1x128xf32> to vector<8x128xf32>
    %c0_17 = arith.constant 0 : index
    %c0_18 = arith.constant 0 : index
    %31 = vector.load %arg8[%c0_17, %c0_18] : memref<8x128xf32, #tpu.memory_space<vmem>>, vector<8x128xf32>
    tpu.vector_store %arg8[%c0_17, %c0_18], %30 {strides = array<i32>} : memref<8x128xf32, #tpu.memory_space<vmem>>, vector<8x128xf32>,
    return
  }
  func.func @transform_0(%arg0: i32, %arg1: i32) -> (i32, i32) {
    %c0_i32 = arith.constant 0 : i32
    %c0_i32_0 = arith.constant 0 : i32
    return %arg0, %c0_i32 : i32, i32
  }
  func.func @transform_1(%arg0: i32, %arg1: i32) -> (i32, i32, i32) {
    %c0_i32 = arith.constant 0 : i32
    %c0_i32_0 = arith.constant 0 : i32
    return %arg0, %arg1, %c0_i32 : i32, i32, i32
  }
  func.func @transform_2(%arg0: i32, %arg1: i32) -> (i32, i32) {
    %c0_i32 = arith.constant 0 : i32
    %c0_i32_0 = arith.constant 0 : i32
    %c0_i32_1 = arith.constant 0 : i32
    return %c0_i32, %c0_i32_0 : i32, i32
  }
  func.func @transform_3(%arg0: i32, %arg1: i32) -> (i32, i32) {
    %c0_i32 = arith.constant 0 : i32
    %c0_i32_0 = arith.constant 0 : i32
    %c0_i32_1 = arith.constant 0 : i32
    return %c0_i32, %c0_i32_0 : i32, i32
  }
  func.func @transform_4(%arg0: i32, %arg1: i32) -> (i32, i32) {
    %c0_i32 = arith.constant 0 : i32
    %c0_i32_0 = arith.constant 0 : i32
    %c0_i32_1 = arith.constant 0 : i32
    return %c0_i32, %c0_i32_0 : i32, i32
  }
  func.func @transform_5(%arg0: i32, %arg1: i32) -> (i32, i32) {
    %c0_i32 = arith.constant 0 : i32
    %c0_i32_0 = arith.constant 0 : i32
    return %arg0, %c0_i32 : i32, i32
  }
  func.func @transform_6(%arg0: i32, %arg1: i32) -> (i32, i32) {
    %c0_i32 = arith.constant 0 : i32
    %c0_i32_0 = arith.constant 0 : i32
    return %arg0, %c0_i32 : i32, i32
  }
}

</mosaic_0001>

<bundles_post_ra>
// kernel: tpu_custom_call.1
= control target key start
LH: loop header
LB: loop body
LE: loop exit
PB: predicated region body
PF: predicated region fallthrough
CT: control target
= control target key end

     0   :  { %12 = vsyncpa [#allocation6], 0  ;;  %s2126_s0 = inlined_call_operand.hbm [shape: f32[8,128], index: 0, kind: input, shape index: {}]   ;;  %s2127_s1 = inlined_call_operand.hbm [shape: f32[8,8,128], index: 1, kind: input, shape index: {}]   ;;  %s2128_s2 = inlined_call_operand.hbm [shape: f32[128,128], index: 2, kind: input, shape index: {}]   ;;  %s2129_s3 = inlined_call_operand.hbm [shape: f32[128,128], index: 3, kind: input, shape index: {}]   ;;  %s2130_s4 = inlined_call_operand.vmem [shape: f32[1,128], index: 4, kind: input, shape index: {}]   ;;  %s2131_s5 = inlined_call_operand.hbm [shape: f32[8,8], index: 5, kind: output, shape index: {0}]   ;;  %s2132_s6 = inlined_call_operand.hbm [shape: f32[8,128], index: 6, kind: output, shape index: {1}]  }
   0x1   :  { %13 = vsyncpa [#allocation9], 0 }
   0x2   :  { %14 = vsyncpa [#allocation12], 0 }
   0x3   :  { %15 = vsyncpa [#allocation7], 0 }
   0x4   :  { %16 = vsyncpa [#allocation15], 0  ;;  %s1817_s21 = smov [#allocation8]   ;;  %s1675_s25 = scalar_lea.hbm %s2127_s1, 1024 }
   0x5   :  { %s32_s22 = sshll.u32 %s1817_s21, 4  ;;  %p1676_p0 = scmp.ne.s32.totalorder %s2127_s1, %s1675_s25  ;;  %s33_s22 = int_to_ptr.vmem [resolvable:$true] %s32_s22 }
   0x6   :  { %p1679_p1 = scmp.lt.u32.totalorder %s1675_s25, %s2127_s1 }
   0x8   :  { %p1681_p2 = pnand %p1679_p1, %p1676_p0 }
   0xa   :  { %1684 = shalt.err (!%p1681_p2)
}
   0xb   :  { %s1685_s30 = scalar_lea.vmem %s33_s22, 1024  ;;  %p1690_p4 = scmp.lt.s32.totalorder %s33_s22, %s33_s22 }
   0xc   :  { %p1686_p3 = scmp.ne.s32.totalorder %s33_s22, %s1685_s30  ;;  %p1691_p5 = scmp.lt.s32.totalorder %s1685_s30, %s1685_s30 }
   0xe   :  { %p1692_p6 = por %p1691_p5, %p1690_p4 }
  0x10   :  { %p1693_p7 = pnand %p1692_p6, %p1686_p3 }
  0x12   :  { %1696 = shalt.err (!%p1693_p7)
}
  0x13   :  { %s1818_s7 = smov 128   ;;  %s1819_s8 = smov 8  }
  0x14   :  { %38 = dma.hbm_to_vmem [thread:$0]  %s2127_s1, 1024, %s33_s22, [#allocation9], %s1818_s7, %s1818_s7, %s1819_s8  }
  0x15   :  { %s1820_s11 = smov [#allocation5]   ;;  %s1821_s13 = smov [#allocation10]  }
  0x16   :  { %s23_s12 = sshll.u32 %s1820_s11, 4  ;;  %s44_s14 = sshll.u32 %s1821_s13, 4  ;;  %s24_s12 = int_to_ptr.vmem [resolvable:$true] %s23_s12  ;;  %s45_s14 = int_to_ptr.vmem [resolvable:$true] %s44_s14 }
  0x17   :  { %s1697_s17 = scalar_lea.hbm %s2126_s0, 128 }
  0x18   :  { %p1698_p8 = scmp.ne.s32.totalorder %s2126_s0, %s1697_s17  ;;  %p1701_p9 = scmp.lt.u32.totalorder %s1697_s17, %s2126_s0 }
  0x1a   :  { %p1703_p10 = pnand %p1701_p9, %p1698_p8 }
  0x1c   :  { %1706 = shalt.err (!%p1703_p10)
}
  0x1d   :  { %s1707_s1 = scalar_lea.vmem %s24_s12, 128  ;;  %p1712_p12 = scmp.lt.s32.totalorder %s24_s12, %s24_s12 }
  0x1e   :  { %p1708_p11 = scmp.ne.s32.totalorder %s24_s12, %s1707_s1  ;;  %p1713_p13 = scmp.lt.s32.totalorder %s1707_s1, %s1707_s1 }
  0x20   :  { %p1714_p0 = por %p1713_p13, %p1712_p12 }
  0x22   :  { %p1715_p1 = pnand %p1714_p0, %p1708_p11 }
  0x24   :  { %1718 = shalt.err (!%p1715_p1)
}
  0x25   :  { %26 = dma.hbm_to_vmem [thread:$0]  %s2126_s0, 128, %s24_s12, [#allocation6]  }
  0x26   :  { %s1719_s26 = scalar_lea.hbm %s2128_s2, 2048 }
  0x27   :  { %p1720_p2 = scmp.ne.s32.totalorder %s2128_s2, %s1719_s26  ;;  %p1723_p3 = scmp.lt.u32.totalorder %s1719_s26, %s2128_s2 }
  0x29   :  { %p1725_p4 = pnand %p1723_p3, %p1720_p2 }
  0x2b   :  { %1728 = shalt.err (!%p1725_p4)
}
  0x2c   :  { %s1729_s9 = scalar_lea.vmem %s45_s14, 2048  ;;  %p1734_p6 = scmp.lt.s32.totalorder %s45_s14, %s45_s14 }
  0x2d   :  { %p1730_p5 = scmp.ne.s32.totalorder %s45_s14, %s1729_s9  ;;  %p1735_p7 = scmp.lt.s32.totalorder %s1729_s9, %s1729_s9 }
  0x2f   :  { %p1736_p8 = por %p1735_p7, %p1734_p6 }
  0x31   :  { %p1737_p9 = pnand %p1736_p8, %p1730_p5 }
  0x33   :  { %1740 = shalt.err (!%p1737_p9)
}
  0x34   :  { %50 = dma.hbm_to_vmem [thread:$0]  %s2128_s2, 2048, %s45_s14, [#allocation9], %s1818_s7, %s1818_s7, %s1819_s8  }
  0x35   :  { %s1822_s11 = smov [#allocation11]   ;;  %s1741_s16 = scalar_lea.hbm %s2129_s3, 2048 }
  0x36   :  { %s56_s12 = sshll.u32 %s1822_s11, 4  ;;  %p1742_p10 = scmp.ne.s32.totalorder %s2129_s3, %s1741_s16  ;;  %s57_s12 = int_to_ptr.vmem [resolvable:$true] %s56_s12 }
  0x37   :  { %p1745_p11 = scmp.lt.u32.totalorder %s1741_s16, %s2129_s3 }
  0x39   :  { %p1747_p12 = pnand %p1745_p11, %p1742_p10 }
  0x3b   :  { %1750 = shalt.err (!%p1747_p12)
}
  0x3c   :  { %s1751_s21 = scalar_lea.vmem %s57_s12, 2048  ;;  %p1756_p0 = scmp.lt.s32.totalorder %s57_s12, %s57_s12 }
  0x3d   :  { %p1752_p13 = scmp.ne.s32.totalorder %s57_s12, %s1751_s21  ;;  %p1757_p1 = scmp.lt.s32.totalorder %s1751_s21, %s1751_s21 }
  0x3f   :  { %p1758_p2 = por %p1757_p1, %p1756_p0 }
  0x41   :  { %p1759_p3 = pnand %p1758_p2, %p1752_p13 }
  0x43   :  { %1762 = shalt.err (!%p1759_p3)
}
  0x44   :  { %62 = dma.hbm_to_vmem [thread:$0]  %s2129_s3, 2048, %s57_s12, [#allocation12], %s1818_s7, %s1818_s7, %s1819_s8  }
  0x45   :  { %1807 = dma.done.wait [#allocation6], 128  }
  0x46   :  { %1808 = vsyncadd [#allocation6], 4294967168 }
  0x47   :  { %1809 = dma.done.wait [#allocation9], 3072  }
  0x48   :  { %1810 = vsyncadd [#allocation9], 4294964224 }
  0x49   :  { %1811 = dma.done.wait [#allocation12], 2048  }
  0x4a   :  { %1812 = vsyncadd [#allocation12], 4294965248  ;;  %v1823_v0 = vmov 0.0|0.0   ;;  %vm1824_vm0 = vmmov 0   ;;  %v1825_v1 = vmov 0.0   ;;  %v86_v2 = vld [vmem:[#allocation10] sm:$0xff]  ;;  %v298_v61 = vlaneseq }
  0x4b   :  { %1570 = vmatprep.subr.bf16.mxu0 %v1823_v0  ;;  %1483 = vmatprep.mubr.msk.f32.mxu0 %vm1824_vm0, %v1825_v1  ;;  %v87_v3 = vld [vmem:[#allocation10 + $0x8] sm:$0xff]  ;;  %v172_v4 = vld [vmem:[#allocation11] sm:$0xff]  ;;  %v88_v7 = vld [vmem:[#allocation10 + $0x10] sm:$0xff]  ;;  %v1826_v59 = vmov 1966171168   ;;  %vm472_vm1 = vcmask 1041409  }
  0x4c   :  { %v1571_v5 = vpack.c.bf16 %v87_v3, %v86_v2  ;;  %v173_v6 = vld [vmem:[#allocation11 + $0x8] sm:$0xff]  ;;  %v89_v8 = vld [vmem:[#allocation10 + $0x18] sm:$0xff]  ;;  %v174_v10 = vld [vmem:[#allocation11 + $0x10] sm:$0xff]  ;;  %v296_v60 = vunpack.c.l.s4 %v1826_v59  ;;  %v1959_v63 = vshrl.u32 %v298_v61, 7  ;;  %vm474_vm2 = vcmask 1042434  }
  0x4d   :  { %v1594_v9 = vpack.c.bf16 %v173_v6, %v172_v4  ;;  %v175_v11 = vld [vmem:[#allocation11 + $0x18] sm:$0xff]  ;;  %v1574_v12 = vpack.c.bf16 %v89_v8, %v88_v7  ;;  %v176_v14 = vld [vmem:[#allocation11 + $0x20] sm:$0xff]  ;;  %v177_v15 = vld [vmem:[#allocation11 + $0x28] sm:$0xff]  ;;  %vm476_vm3 = vcmask 1043459   ;;  %vm478_vm4 = vcmask 1044484  }
  0x4e   :  { %1572 = vmatpush3.bf16.msra.mxu0 %v1571_v5  ;;  %v1598_v13 = vpack.c.bf16 %v175_v11, %v174_v10  ;;  %v90_v16 = vld [vmem:[#allocation10 + $0x20] sm:$0xff]  ;;  %v91_v17 = vld [vmem:[#allocation10 + $0x28] sm:$0xff]  ;;  %v1602_v18 = vpack.c.bf16 %v177_v15, %v176_v14  ;;  %v178_v20 = vld [vmem:[#allocation11 + $0x30] sm:$0xff]  ;;  %v297_v62 = vunpack.c.0.s8 %v296_v60  ;;  %v1963_v6 = vsub.s32 0, %v1959_v63 }
  0x4f   :  { %1595 = vmatprep.subr.bf16.mxu1 %v1594_v9  ;;  %1573 = vmatprep.subr.bf16.mxu0 %v1823_v0  ;;  %v1577_v19 = vpack.c.bf16 %v91_v17, %v90_v16  ;;  %v179_v21 = vld [vmem:[#allocation11 + $0x38] sm:$0xff]  ;;  %v92_v22 = vld [vmem:[#allocation10 + $0x30] sm:$0xff]  ;;  %v180_v26 = vld [vmem:[#allocation11 + $0x40] sm:$0xff]  ;;  %vm480_vm5 = vcmask 1045509   ;;  %vm482_vm6 = vcmask 1046534   ;;  %vm484_vm7 = vcmask 1047559  }
  0x50   :  { %1597 = vmatpush3.bf16.msra.mxu1 %v1594_v9  ;;  %v93_v23 = vld [vmem:[#allocation10 + $0x38] sm:$0xff]  ;;  %v1606_v24 = vpack.c.bf16 %v179_v21, %v178_v20  ;;  %v181_v27 = vld [vmem:[#allocation11 + $0x48] sm:$0xff]  ;;  %v77_v28 = vld [vmem:[#allocation8] sm:$0xff]  ;;  %vm487_vm8 = vcmask 64512  }
  0x51   :  { %1599 = vmatprep.subr.bf16.mxu1 %v1598_v13  ;;  %v1580_v25 = vpack.c.bf16 %v93_v23, %v92_v22  ;;  %v94_v29 = vld [vmem:[#allocation10 + $0x40] sm:$0xff]  ;;  %v95_v30 = vld [vmem:[#allocation10 + $0x48] sm:$0xff]  ;;  %1518 = vmatprep.mubr.f32.mxu1 %v77_v28  ;;  %v1610_v31 = vpack.c.bf16 %v181_v27, %v180_v26  ;;  %v182_v33 = vld [vmem:[#allocation11 + $0x50] sm:$0xff] }
  0x52   :  { %1575 = vmatpush3.bf16.msra.mxu0 %v1574_v12  ;;  %v1583_v32 = vpack.c.bf16 %v95_v30, %v94_v29  ;;  %v183_v34 = vld [vmem:[#allocation11 + $0x58] sm:$0xff]  ;;  %v96_v35 = vld [vmem:[#allocation10 + $0x50] sm:$0xff]  ;;  %v184_v39 = vld [vmem:[#allocation11 + $0x60] sm:$0xff] }
  0x53   :  { %1576 = vmatprep.subr.bf16.mxu0 %v1823_v0  ;;  %v97_v36 = vld [vmem:[#allocation10 + $0x58] sm:$0xff]  ;;  %v1614_v37 = vpack.c.bf16 %v183_v34, %v182_v33  ;;  %v185_v40 = vld [vmem:[#allocation11 + $0x68] sm:$0xff]  ;;  %v98_v41 = vld [vmem:[#allocation10 + $0x60] sm:$0xff] }
  0x54   :  { %1601 = vmatpush3.bf16.msra.mxu1 %v1598_v13  ;;  %v1586_v38 = vpack.c.bf16 %v97_v36, %v96_v35  ;;  %v99_v42 = vld [vmem:[#allocation10 + $0x68] sm:$0xff]  ;;  %v1618_v43 = vpack.c.bf16 %v185_v40, %v184_v39  ;;  %v186_v45 = vld [vmem:[#allocation11 + $0x70] sm:$0xff]  ;;  %v187_v46 = vld [vmem:[#allocation11 + $0x78] sm:$0xff] }
  0x55   :  { %1603 = vmatprep.subr.bf16.mxu1 %v1602_v18  ;;  %v1589_v44 = vpack.c.bf16 %v99_v42, %v98_v41  ;;  %v100_v47 = vld [vmem:[#allocation10 + $0x70] sm:$0xff]  ;;  %v101_v48 = vld [vmem:[#allocation10 + $0x78] sm:$0xff]  ;;  %v1622_v49 = vpack.c.bf16 %v187_v46, %v186_v45  ;;  %v1933_v52 = vld [vmem:[#allocation8 + $0x8] sm:$0xff] }
  0x56   :  { %1578 = vmatpush3.bf16.msra.mxu0 %v1577_v19  ;;  %v1592_v50 = vpack.c.bf16 %v101_v48, %v100_v47  ;;  %v85_v51 = vld [vmem:[#allocation5] sm:$0xff]  ;;  %v1935_v53 = vld [vmem:[#allocation8 + $0x10] sm:$0xff]  ;;  %v81_v54 = vld [vmem:[#allocation8 + $0x20] sm:$0xff] }
  0x57   :  { %1579 = vmatprep.subr.bf16.mxu0 %v1823_v0  ;;  %v1943_v55 = vld [vmem:[#allocation8 + $0x18] sm:$0xff]  ;;  %v1947_v56 = vld [vmem:[#allocation8 + $0x28] sm:$0xff]  ;;  %v1949_v57 = vld [vmem:[#allocation8 + $0x30] sm:$0xff] }
  0x58   :  { %1605 = vmatpush3.bf16.msra.mxu1 %v1602_v18  ;;  %v1953_v58 = vld [vmem:[#allocation8 + $0x38] sm:$0xff] }
  0x59   :  { %1607 = vmatprep.subr.bf16.mxu1 %v1606_v24  ;;  %v1385_v42 = vld [vmem:[%s2130_s4] ss:$0 sm:$0xff]  ;;  %s1828_s4 = smov [#allocation13]  }
  0x5a   :  { %1581 = vmatpush3.bf16.msra.mxu0 %v1580_v25  ;;  %s1360_s8 = sshll.u32 %s1828_s4, 4  ;;  %s1361_s8 = int_to_ptr.vmem [resolvable:$true] %s1360_s8 }
  0x5b   :  { %1582 = vmatprep.subr.bf16.mxu0 %v1823_v0  ;;  %s1763_s1 = scalar_lea.vmem %s1361_s8, 128  ;;  %p1768_p5 = scmp.lt.s32.totalorder %s1361_s8, %s1361_s8 }
  0x5c   :  { %1609 = vmatpush3.bf16.msra.mxu1 %v1606_v24  ;;  %p1764_p4 = scmp.ne.s32.totalorder %s1361_s8, %s1763_s1  ;;  %p1769_p6 = scmp.lt.s32.totalorder %s1763_s1, %s1763_s1 }
  0x5d   :  { %1611 = vmatprep.subr.bf16.mxu1 %v1610_v31 }
  0x5e   :  { %1584 = vmatpush3.bf16.msra.mxu0 %v1583_v32  ;;  %p1770_p7 = por %p1769_p6, %p1768_p5 }
  0x5f   :  { %1585 = vmatprep.subr.bf16.mxu0 %v1823_v0 }
  0x60   :  { %1613 = vmatpush3.bf16.msra.mxu1 %v1610_v31  ;;  %p1771_p8 = pnand %p1770_p7, %p1764_p4 }
  0x61   :  { %1615 = vmatprep.subr.bf16.mxu1 %v1614_v37 }
  0x62   :  { %1587 = vmatpush3.bf16.msra.mxu0 %v1586_v38 }
  0x63   :  { %1588 = vmatprep.subr.bf16.mxu0 %v1823_v0 }
  0x64   :  { %1617 = vmatpush3.bf16.msra.mxu1 %v1614_v37 }
  0x65   :  { %1619 = vmatprep.subr.bf16.mxu1 %v1618_v43 }
  0x66   :  { %1590 = vmatpush3.bf16.msra.mxu0 %v1589_v44 }
  0x67   :  { %1591 = vmatprep.subr.bf16.mxu0 %v1823_v0  ;;  %v300_v0 = vsub.s32 %v297_v62, %v1959_v63 }
  0x68   :  { %1621 = vmatpush3.bf16.msra.mxu1 %v1618_v43 }
  0x69   :  { %1623 = vmatprep.subr.bf16.mxu1 %v1622_v49 }
  0x6a   :  { %1593 = vmatpush3.bf16.msra.mxu0 %v1592_v50 }
  0x6b   :  { %1530 = vmatprep.subr.mxu0 %v1825_v1 }
  0x6c   :  { %1625 = vmatpush3.bf16.msra.mxu1 %v1622_v49 }
  0x6d   :  { %1484 = vmatmul.mubr.f32.vlgmr.msra.gmra.mrb[0].mxu0 %v85_v51  ;;  %1550 = vmatprep.subr.mxu1 %v1825_v1 }
  0x6e   :  { %1531 = vmatpush3.msra.mxu0 %v77_v28  ;;  %1532 = vmatprep.mubr.msk.f32.mxu0 %vm1824_vm0, %v1825_v1 }
  0x6f   :  { %1519 = vmatmul.mubr.f32.vlgmr.msra.gmra.mrb[0].mxu1 %v1933_v52  ;;  %1535 = vmatprep.subr.mxu0 %v1825_v1 }
  0x70   :  { %1521 = vmatprep.mubr.f32.mxu1 %v1935_v53  ;;  %1551 = vmatpush3.msra.mxu1 %v81_v54 }
  0x71   :  { %1560 = vmatprep.subr.mxu1 %v1825_v1 }
  0x73   :  { %1522 = vmatmul.mubr.f32.gmra.mrb[2].mxu1 %v1943_v55 }
  0x74   :  { %1524 = vmatprep.mubr.f32.mxu1 %v81_v54 }
  0x77   :  { %1525 = vmatmul.mubr.f32.gmra.mrb[4].mxu1 %v1947_v56 }
  0x78   :  { %1527 = vmatprep.mubr.f32.mxu1 %v1949_v57 }
  0x7b   :  { %1528 = vmatmul.mubr.f32.gmra.mrb[6].mxu1 %v1953_v58 }
  0x7c   :  { %1552 = vmatprep.mubr.msk.f32.mxu1 %vm1824_vm0, %v1825_v1 }
 0x140   :  { %v168_v2 = vpop.f32.mrb[0].mxu0 }
 0x141   :  { %v294_v3 = vcombine.high %v168_v2, %v168_v2  ;;  %v301_v4 = vrot.slane %v168_v2, %v300_v0  ;;  %v1485_v5 = vpop.f32.mrb[1].mxu0 }
 0x142   :  { %v1520_v7 = vpop.f32.mrb[0].mxu1 }
 0x143   :  { %v308_v8 = vrot.slane %v294_v3, %v300_v0  ;;  %v309_v9 = vcombine.high %v301_v4, %v301_v4  ;;  %v317_v10 = vrot.slane %v301_v4, %v300_v0  ;;  %v254_v11 = vpop.f32.mrb[1].mxu1  ;;  %v439_v4 = vand.u32 127, %v298_v61 }
 0x145   :  { %v310_v12 = vcombine.high %v308_v8, %v308_v8  ;;  %v331_v13 = vrot.slane %v309_v9, %v300_v0  ;;  %v346_v14 = vrot.slane %v317_v10, %v1963_v6  ;;  %v339_v15 = vcombine.high %v317_v10, %v317_v10 }
 0x146   :  { %v1523_v16 = vpop.f32.mrb[2].mxu1  ;;  %v324_v17 = vrot.slane %v308_v8, %v300_v0 }
 0x147   :  { %v350_v18 = vrot.slane %v331_v13, %v1963_v6  ;;  %v383_v19 = vadd.f32 %v346_v14, %v254_v11  ;;  %v341_v20 = vcombine.high %v331_v13, %v331_v13  ;;  %v264_v21 = vpop.f32.mrb[3].mxu1  ;;  %v354_v22 = vrot.slane %v339_v15, %v1963_v6 }
 0x148   :  { %v338_v23 = vrot.slane %v310_v12, %v300_v0  ;;  %v362_v29 = vrot.slane %v324_v17, %v1963_v6  ;;  %v340_v31 = vcombine.high %v324_v17, %v324_v17 }
 0x149   :  { %v384_v24 = vadd.f32 %v1520_v7, %v350_v18  ;;  %1641 = vtanh.f32 %v383_v19  ;;  %v358_v25 = vrot.slane %v341_v20, %v1963_v6  ;;  %v385_v26 = vadd.f32 %v354_v22, %v264_v21 }
 0x14a   :  { %v1526_v27 = vpop.f32.mrb[4].mxu1  ;;  %v366_v28 = vrot.slane %v338_v23, %v1963_v6  ;;  %v342_v30 = vcombine.high %v338_v23, %v338_v23  ;;  %v370_v38 = vrot.slane %v340_v31, %v1963_v6  ;;  %v1978_v7 = vsub.s32 %v439_v4, %v1959_v63 }
 0x14b   :  { %1643 = vtanh.f32 %v384_v24  ;;  %v386_v32 = vadd.f32 %v1523_v16, %v358_v25  ;;  %v274_v33 = vpop.f32.mrb[5].mxu1  ;;  %v498_v31 = vsub.s32 1, %v1959_v63 }
 0x14c   :  { %1645 = vtanh.f32 %v385_v26  ;;  %v388_v34 = vadd.f32 %v1526_v27, %v366_v28  ;;  %v387_v35 = vadd.f32 %v362_v29, %v274_v33  ;;  %v374_v36 = vrot.slane %v342_v30, %v1963_v6 }
 0x14d   :  { %1647 = vtanh.f32 %v386_v32  ;;  %v1827_v30 = vmov 0   ;;  %v502_v32 = vsub.s32 2, %v1959_v63  ;;  %v506_v33 = vsub.s32 3, %v1959_v63 }
 0x14e   :  { %v1529_v37 = vpop.f32.mrb[6].mxu1  ;;  %1649 = vtanh.f32 %v387_v35  ;;  %1640 = vset.pattern.permute.xlu0 %v1827_v30  ;;  %1639 = vset.pattern.permute.xlu1 %v1827_v30 }
 0x14f   :  { %v390_v39 = vadd.f32 %v1529_v37, %v374_v36  ;;  %v284_v40 = vpop.f32.mrb[7].mxu1  ;;  %1651 = vtanh.f32 %v388_v34 }
 0x150   :  { %v389_v41 = vadd.f32 %v370_v38, %v284_v40  ;;  %v510_v38 = vsub.s32 4, %v1959_v63 }
 0x152   :  { %1653 = vtanh.f32 %v389_v41 }
 0x153   :  { %v1642_v43 = vpop.eup %1641  ;;  %1655 = vtanh.f32 %v390_v39 }
 0x154   :  { %v406_v44 = vmul.f32 %v1642_v43, %v1385_v42 }
 0x155   :  { %v1644_v45 = vpop.eup %1643 }
 0x156   :  { %v1646_v46 = vpop.eup %1645  ;;  %414 = vadd.xlane.f32.xlu0 %v406_v44  ;;  %v407_v49 = vmul.f32 %v1644_v45, %v1385_v42  ;;  %v514_v45 = vsub.s32 5, %v1959_v63 }
 0x157   :  { %v408_v47 = vmul.f32 %v1646_v46, %v1385_v42  ;;  %v1648_v48 = vpop.eup %1647 }
 0x158   :  { %v1650_v50 = vpop.eup %1649  ;;  %v409_v51 = vmul.f32 %v1648_v48, %v1385_v42 }
 0x159   :  { %418 = vadd.xlane.f32.xlu1 %v408_v47  ;;  %v1652_v54 = vpop.eup %1651  ;;  %v410_v59 = vmul.f32 %v1650_v50, %v1385_v42 }
 0x15a   :  { %416 = vadd.xlane.f32.xlu0 %v407_v49  ;;  %v411_v62 = vmul.f32 %v1652_v54, %v1385_v42  ;;  %v518_v49 = vsub.s32 6, %v1959_v63 }
 0x15c   :  { %v1654_v60 = vpop.eup %1653 }
 0x15d   :  { %420 = vadd.xlane.f32.xlu1 %v409_v51  ;;  %v1656_v0 = vpop.eup %1655  ;;  %v412_v2 = vmul.f32 %v1654_v60, %v1385_v42 }
 0x15e   :  { %422 = vadd.xlane.f32.xlu0 %v410_v59  ;;  %v413_v3 = vmul.f32 %v1656_v0, %v1385_v42  ;;  %v522_v59 = vsub.s32 7, %v1959_v63 }
 0x161   :  { %424 = vadd.xlane.f32.xlu1 %v411_v62 }
 0x162   :  { %426 = vadd.xlane.f32.xlu0 %v412_v2 }
 0x165   :  { %428 = vadd.xlane.f32.xlu1 %v413_v3 }
 0x1e3   :  { %v415_v5 = vpop.xlane.xlu0 %414 }
 0x1e4   :  { %v443_v10 = vrot.slane %v415_v5, %v1978_v7 }
 0x1e6   :  { %v419_v8 = vpop.xlane.xlu1 %418 }
 0x1e7   :  { %v417_v9 = vpop.xlane.xlu0 %416  ;;  %v451_v12 = vrot.slane %v419_v8, %v1978_v7 }
 0x1e8   :  { %v447_v11 = vrot.slane %v417_v9, %v1978_v7 }
 0x1ea   :  { %v473_v13 = vsel %vm472_vm1, %v447_v11, %v443_v10  ;;  %v421_v14 = vpop.xlane.xlu1 %420 }
 0x1eb   :  { %v475_v61 = vsel %vm474_vm2, %v451_v12, %v473_v13  ;;  %v455_v15 = vrot.slane %v421_v14, %v1978_v7  ;;  %v423_v16 = vpop.xlane.xlu0 %422 }
 0x1ec   :  { %v459_v17 = vrot.slane %v423_v16, %v1978_v7 }
 0x1ed   :  { %v477_v18 = vsel %vm476_vm3, %v455_v15, %v475_v61 }
 0x1ee   :  { %v479_v19 = vsel %vm478_vm4, %v459_v17, %v477_v18  ;;  %v425_v20 = vpop.xlane.xlu1 %424 }
 0x1ef   :  { %v463_v21 = vrot.slane %v425_v20, %v1978_v7  ;;  %v427_v22 = vpop.xlane.xlu0 %426 }
 0x1f0   :  { %v467_v23 = vrot.slane %v427_v22, %v1978_v7 }
 0x1f1   :  { %v481_v24 = vsel %vm480_vm5, %v463_v21, %v479_v19 }
 0x1f2   :  { %v429_v25 = vpop.xlane.xlu1 %428  ;;  %v483_v26 = vsel %vm482_vm6, %v467_v23, %v481_v24 }
 0x1f3   :  { %v471_v27 = vrot.slane %v429_v25, %v1978_v7 }
 0x1f5   :  { %v485_v28 = vsel %vm484_vm7, %v471_v27, %v483_v26 }
 0x1f6   :  { %v488_v29 = vsel %vm487_vm8, %v485_v28, -inf }
 0x1f7   :  { %489 = vmax.xlane.f32.xlu0 %v488_v29 }
 0x284   :  { %v490_v34 = vpop.xlane.xlu0 %489 }
 0x285   :  { %v495_v35 = vrot.slane %v490_v34, %v1963_v6  ;;  %v499_v36 = vrot.slane %v490_v34, %v498_v31  ;;  %v503_v37 = vrot.slane %v490_v34, %v502_v32  ;;  %v507_v39 = vrot.slane %v490_v34, %v506_v33 }
 0x286   :  { %v511_v46 = vrot.slane %v490_v34, %v510_v38  ;;  %v515_v50 = vrot.slane %v490_v34, %v514_v45  ;;  %v519_v60 = vrot.slane %v490_v34, %v518_v49  ;;  %v523_v4 = vrot.slane %v490_v34, %v522_v59 }
 0x287   :  { %v532_v40 = vsub.f32 %v415_v5, %v495_v35  ;;  %v533_v41 = vsub.f32 %v417_v9, %v499_v36  ;;  %v534_v42 = vsub.f32 %v419_v8, %v503_v37  ;;  %v535_v47 = vsub.f32 %v421_v14, %v507_v39 }
 0x288   :  { %v536_v51 = vsub.f32 %v423_v16, %v511_v46  ;;  %v537_v62 = vsub.f32 %v425_v20, %v515_v50  ;;  %v538_v5 = vsub.f32 %v427_v22, %v519_v60  ;;  %v539_v10 = vsub.f32 %v429_v25, %v523_v4 }
 0x289   :  { %v540_v43 = vmul.f32 1.442695, %v532_v40  ;;  %v542_v44 = vmul.f32 1.442695, %v533_v41  ;;  %v544_v48 = vmul.f32 1.442695, %v534_v42 }
 0x28a   :  { %v546_v54 = vmul.f32 1.442695, %v535_v47  ;;  %v548_v0 = vmul.f32 1.442695, %v536_v51  ;;  %v550_v8 = vmul.f32 1.442695, %v537_v62 }
 0x28b   :  { %1657 = vpow2.f32 %v540_v43  ;;  %v552_v11 = vmul.f32 1.442695, %v538_v5  ;;  %v554_v13 = vmul.f32 1.442695, %v539_v10 }
 0x28c   :  { %1659 = vpow2.f32 %v542_v44 }
 0x28d   :  { %1661 = vpow2.f32 %v544_v48 }
 0x28e   :  { %1663 = vpow2.f32 %v546_v54 }
 0x28f   :  { %1665 = vpow2.f32 %v548_v0 }
 0x290   :  { %1667 = vpow2.f32 %v550_v8 }
 0x291   :  { %1669 = vpow2.f32 %v552_v11 }
 0x292   :  { %1671 = vpow2.f32 %v554_v13 }
 0x295   :  { %v1658_v2 = vpop.eup %1657 }
 0x296   :  { %v1660_v3 = vpop.eup %1659  ;;  %565 = vperm.xlu1 %1639, %v1658_v2  }
 0x297   :  { %568 = vperm.xlu0 %1640, %v1660_v3   ;;  %v1662_v9 = vpop.eup %1661 }
 0x298   :  { %v1664_v12 = vpop.eup %1663 }
 0x299   :  { %v1666_v14 = vpop.eup %1665 }
 0x29a   :  { %571 = vperm.xlu1 %1639, %v1662_v9   ;;  %v1668_v61 = vpop.eup %1667 }
 0x29b   :  { %v1670_v15 = vpop.eup %1669 }
 0x29c   :  { %v1672_v16 = vpop.eup %1671 }
 0x29e   :  { %574 = vperm.xlu1 %1639, %v1664_v12  }
 0x2a2   :  { %577 = vperm.xlu1 %1639, %v1666_v14  }
 0x2a6   :  { %580 = vperm.xlu1 %1639, %v1668_v61  }
 0x2aa   :  { %583 = vperm.xlu1 %1639, %v1670_v15  }
 0x2ae   :  { %586 = vperm.xlu1 %1639, %v1672_v16  }
 0x315   :  { %v566_v17 = vpop.permute.xlu1 %565 }
 0x316   :  { %v569_v21 = vpop.permute.xlu0 %568  ;;  %v591_v24 = vrot.slane %v566_v17, %v1978_v7 }
 0x317   :  { %v595_v23 = vrot.slane %v569_v21, %v1978_v7 }
 0x319   :  { %v572_v18 = vpop.permute.xlu1 %571  ;;  %v620_v29 = vsel %vm472_vm1, %v595_v23, %v591_v24 }
 0x31a   :  { %v599_v25 = vrot.slane %v572_v18, %v1978_v7 }
 0x31c   :  { %v621_v34 = vsel %vm474_vm2, %v599_v25, %v620_v29 }
 0x31d   :  { %v575_v19 = vpop.permute.xlu1 %574 }
 0x31e   :  { %v603_v26 = vrot.slane %v575_v19, %v1978_v7 }
 0x320   :  { %v622_v36 = vsel %vm476_vm3, %v603_v26, %v621_v34 }
 0x321   :  { %v578_v20 = vpop.permute.xlu1 %577 }
 0x322   :  { %v607_v27 = vrot.slane %v578_v20, %v1978_v7 }
 0x324   :  { %v623_v37 = vsel %vm478_vm4, %v607_v27, %v622_v36 }
 0x325   :  { %v581_v22 = vpop.permute.xlu1 %580 }
 0x326   :  { %v611_v30 = vrot.slane %v581_v22, %v1978_v7 }
 0x328   :  { %v624_v40 = vsel %vm480_vm5, %v611_v30, %v623_v37 }
 0x329   :  { %v584_v28 = vpop.permute.xlu1 %583 }
 0x32a   :  { %v615_v35 = vrot.slane %v584_v28, %v1978_v7 }
 0x32c   :  { %v625_v42 = vsel %vm482_vm6, %v615_v35, %v624_v40 }
 0x32d   :  { %v587_v39 = vpop.permute.xlu1 %586 }
 0x32e   :  { %v619_v41 = vrot.slane %v587_v39, %v1978_v7 }
 0x330   :  { %v626_v43 = vsel %vm484_vm7, %v619_v41, %v625_v42 }
 0x331   :  { %v628_v44 = vsel %vm487_vm8, %v626_v43, 0.0 }
 0x332   :  { %629 = vadd.xlane.f32.xlu1 %v628_v44 }
 0x3bf   :  { %v630_v46 = vpop.xlane.xlu1 %629 }
 0x3c0   :  { %1673 = vrcp.f32 %v630_v46 }
 0x3ca   :  { %v1674_v47 = vpop.eup %1673 }
 0x3cb   :  { %v636_v48 = vrot.slane %v1674_v47, %v1963_v6  ;;  %v640_v51 = vrot.slane %v1674_v47, %v498_v31  ;;  %v644_v60 = vrot.slane %v1674_v47, %v502_v32  ;;  %v648_v0 = vrot.slane %v1674_v47, %v506_v33 }
 0x3cc   :  { %v652_v5 = vrot.slane %v1674_v47, %v510_v38  ;;  %v656_v31 = vrot.slane %v1674_v47, %v514_v45  ;;  %v660_v32 = vrot.slane %v1674_v47, %v518_v49  ;;  %v664_v33 = vrot.slane %v1674_v47, %v522_v59 }
 0x3cd   :  { %v673_v50 = vmul.f32 %v1658_v2, %v636_v48  ;;  %v674_v54 = vmul.f32 %v1660_v3, %v640_v51  ;;  %v675_v62 = vmul.f32 %v1662_v9, %v644_v60  ;;  %v676_v4 = vmul.f32 %v1664_v12, %v648_v0 }
 0x3ce   :  { %v677_v6 = vmul.f32 %v1666_v14, %v652_v5  ;;  %v678_v2 = vmul.f32 %v1668_v61, %v656_v31  ;;  %v679_v3 = vmul.f32 %v1670_v15, %v660_v32  ;;  %v680_v8 = vmul.f32 %v1672_v16, %v664_v33 }
 0x3cf   :  { %690 = vperm.xlu0 %1640, %v673_v50  }
 0x3d3   :  { %693 = vperm.xlu0 %1640, %v674_v54  }
 0x3d7   :  { %696 = vperm.xlu0 %1640, %v675_v62  }
 0x3db   :  { %699 = vperm.xlu0 %1640, %v676_v4  }
 0x3df   :  { %702 = vperm.xlu0 %1640, %v677_v6  }
 0x3e3   :  { %705 = vperm.xlu0 %1640, %v678_v2  }
 0x3e7   :  { %708 = vperm.xlu0 %1640, %v679_v3  }
 0x3eb   :  { %711 = vperm.xlu0 %1640, %v680_v8  }
 0x44e   :  { %v691_v9 = vpop.permute.xlu0 %690 }
 0x44f   :  { %v716_v38 = vrot.slane %v691_v9, %v1978_v7 }
 0x451   :  { %1533 = vmatmul.mubr.msk.f32.vlgmr.msra.gmra.mrb[2].mxu0 %vm487_vm8, %v716_v38 }
 0x452   :  { %v694_v10 = vpop.permute.xlu0 %693  ;;  %1536 = vmatpush3.msra.mxu0 %v1933_v52  ;;  %1537 = vmatprep.mubr.msk.f32.mxu0 %vm1824_vm0, %v1825_v1 }
 0x453   :  { %v720_v45 = vrot.slane %v694_v10, %v1978_v7  ;;  %1540 = vmatprep.subr.mxu0 %v1825_v1 }
 0x455   :  { %1538 = vmatmul.mubr.msk.f32.vlgmr.msra.gmra.mrb[4].mxu0 %vm487_vm8, %v720_v45  ;;  %v745_v13 = vsel %vm472_vm1, %v720_v45, %v716_v38 }
 0x456   :  { %v697_v63 = vpop.permute.xlu0 %696  ;;  %1541 = vmatpush3.msra.mxu0 %v1935_v53  ;;  %1542 = vmatprep.mubr.msk.f32.mxu0 %vm1824_vm0, %v1825_v1 }
 0x457   :  { %v724_v49 = vrot.slane %v697_v63, %v1978_v7  ;;  %1545 = vmatprep.subr.mxu0 %v1825_v1 }
 0x459   :  { %1543 = vmatmul.mubr.msk.f32.vlgmr.msra.gmra.mrb[6].mxu0 %vm487_vm8, %v724_v49  ;;  %v746_v61 = vsel %vm474_vm2, %v724_v49, %v745_v13 }
 0x45a   :  { %v700_v52 = vpop.permute.xlu0 %699  ;;  %1546 = vmatpush3.msra.mxu0 %v1943_v55  ;;  %1547 = vmatprep.mubr.msk.f32.mxu0 %vm1824_vm0, %v1825_v1 }
 0x45b   :  { %v728_v59 = vrot.slane %v700_v52, %v1978_v7  ;;  %1555 = vmatprep.subr.mxu0 %v1825_v1 }
 0x45d   :  { %1548 = vmatmul.mubr.msk.f32.vlgmr.msra.gmra.mrb[8].mxu0 %vm487_vm8, %v728_v59 }
 0x45e   :  { %v703_v53 = vpop.permute.xlu0 %702  ;;  %1556 = vmatpush3.msra.mxu0 %v1947_v56  ;;  %1557 = vmatprep.mubr.msk.f32.mxu0 %vm1824_vm0, %v1825_v1 }
 0x45f   :  { %v732_v11 = vrot.slane %v703_v53, %v1978_v7  ;;  %1565 = vmatprep.subr.mxu0 %v1825_v1 }
 0x461   :  { %1553 = vmatmul.mubr.msk.f32.vlgmr.msra.gmra.mrb[8].mxu1 %vm487_vm8, %v732_v11 }
 0x462   :  { %v706_v55 = vpop.permute.xlu0 %705  ;;  %1561 = vmatpush3.msra.mxu1 %v1949_v57  ;;  %1562 = vmatprep.mubr.msk.f32.mxu1 %vm1824_vm0, %v1825_v1  ;;  %v747_v57 = vsel %vm476_vm3, %v728_v59, %v746_v61 }
 0x463   :  { %v736_v12 = vrot.slane %v706_v55, %v1978_v7  ;;  %v748_v15 = vsel %vm478_vm4, %v732_v11, %v747_v57 }
 0x465   :  { %1558 = vmatmul.mubr.msk.f32.vlgmr.msra.gmra.mrb[10].mxu0 %vm487_vm8, %v736_v12  ;;  %v749_v17 = vsel %vm480_vm5, %v736_v12, %v748_v15 }
 0x466   :  { %v709_v56 = vpop.permute.xlu0 %708  ;;  %1566 = vmatpush3.msra.mxu0 %v1953_v58  ;;  %1567 = vmatprep.mubr.msk.f32.mxu0 %vm1824_vm0, %v1825_v1 }
 0x467   :  { %v740_v14 = vrot.slane %v709_v56, %v1978_v7 }
 0x469   :  { %1563 = vmatmul.mubr.msk.f32.vlgmr.msra.gmra.mrb[10].mxu1 %vm487_vm8, %v740_v14  ;;  %v750_v18 = vsel %vm482_vm6, %v740_v14, %v749_v17 }
 0x46a   :  { %v712_v16 = vpop.permute.xlu0 %711 }
 0x46b   :  { %v744_v58 = vrot.slane %v712_v16, %v1978_v7 }
 0x46d   :  { %1568 = vmatmul.mubr.msk.f32.vlgmr.msra.gmra.mrb[12].mxu0 %vm487_vm8, %v744_v58  ;;  %v751_v1 = vsel %vm484_vm7, %v744_v58, %v750_v18 }
 0x46e   :  { %753 = vst.msk [vmem:[#allocation13] sm:$0xff] %vm487_vm8, %v751_v1 }
 0x46f   :  { %1774 = shalt.err (!%p1771_p8)
}
 0x470   :  { %s1775_s24 = scalar_lea.hbm %s2131_s5, 128 }
 0x471   :  { %p1776_p9 = scmp.ne.s32.totalorder %s2131_s5, %s1775_s24  ;;  %p1779_p10 = scmp.lt.u32.totalorder %s1775_s24, %s2131_s5 }
 0x473   :  { %p1781_p11 = pnand %p1779_p10, %p1776_p9 }
 0x475   :  { %1784 = shalt.err (!%p1781_p11)
}
 0x476   :  { %1363 = dma.vmem_to_hbm [thread:$0]  %s1361_s8, 128, %s2131_s5, [#allocation7]  }
 0x477   :  { %s1829_s5 = smov [#allocation14]  }
 0x478   :  { %s1370_s9 = sshll.u32 %s1829_s5, 4  ;;  %s1371_s9 = int_to_ptr.vmem [resolvable:$true] %s1370_s9 }
 0x479   :  { %s1785_s0 = scalar_lea.vmem %s1371_s9, 128  ;;  %p1790_p13 = scmp.lt.s32.totalorder %s1371_s9, %s1371_s9 }
 0x47a   :  { %p1786_p12 = scmp.ne.s32.totalorder %s1371_s9, %s1785_s0  ;;  %p1791_p0 = scmp.lt.s32.totalorder %s1785_s0, %s1785_s0 }
 0x47c   :  { %p1792_p1 = por %p1791_p0, %p1790_p13 }
 0x47e   :  { %p1793_p2 = pnand %p1792_p1, %p1786_p12 }
 0x524   :  { %v822_v7 = vpop.f32.mrb[2].mxu0 }
 0x525   :  { %v1534_v19 = vpop.f32.mrb[3].mxu0 }
 0x528   :  { %v894_v20 = vpop.f32.mrb[4].mxu0 }
 0x529   :  { %v1338_v21 = vrot.slane %v894_v20, 7  ;;  %v1539_v22 = vpop.f32.mrb[5].mxu0 }
 0x52b   :  { %v1339_v23 = vsel %vm472_vm1, %v1338_v21, %v822_v7 }
 0x52c   :  { %v966_v24 = vpop.f32.mrb[6].mxu0 }
 0x52d   :  { %v1340_v25 = vrot.slane %v966_v24, 6  ;;  %v1544_v26 = vpop.f32.mrb[7].mxu0 }
 0x52f   :  { %v1341_v27 = vsel %vm474_vm2, %v1340_v25, %v1339_v23 }
 0x530   :  { %v1038_v28 = vpop.f32.mrb[8].mxu0 }
 0x531   :  { %v1342_v29 = vrot.slane %v1038_v28, 5  ;;  %v1549_v30 = vpop.f32.mrb[9].mxu0 }
 0x533   :  { %v1343_v34 = vsel %vm476_vm3, %v1342_v29, %v1341_v27 }
 0x534   :  { %v1110_v35 = vpop.f32.mrb[8].mxu1 }
 0x535   :  { %v1344_v36 = vrot.slane %v1110_v35, 4  ;;  %v1554_v37 = vpop.f32.mrb[9].mxu1 }
 0x537   :  { %v1345_v39 = vsel %vm478_vm4, %v1344_v36, %v1343_v34 }
 0x538   :  { %v1182_v40 = vpop.f32.mrb[10].mxu0 }
 0x539   :  { %v1346_v41 = vrot.slane %v1182_v40, 3  ;;  %v1559_v42 = vpop.f32.mrb[11].mxu0 }
 0x53b   :  { %v1347_v43 = vsel %vm480_vm5, %v1346_v41, %v1345_v39 }
 0x53c   :  { %v1254_v44 = vpop.f32.mrb[10].mxu1 }
 0x53d   :  { %v1348_v46 = vrot.slane %v1254_v44, 2  ;;  %v1564_v47 = vpop.f32.mrb[11].mxu1 }
 0x53f   :  { %v1349_v48 = vsel %vm482_vm6, %v1348_v46, %v1347_v43 }
 0x540   :  { %v1326_v50 = vpop.f32.mrb[12].mxu0 }
 0x541   :  { %v1350_v51 = vrot.slane %v1326_v50, 1  ;;  %v1569_v54 = vpop.f32.mrb[13].mxu0 }
 0x543   :  { %v1351_v60 = vsel %vm484_vm7, %v1350_v51, %v1349_v48 }
 0x544   :  { %1353 = vst [vmem:[#allocation14] sm:$0xff] %v1351_v60 }
 0x545   :  { %1796 = shalt.err (!%p1793_p2)
}
 0x546   :  { %s1797_s12 = scalar_lea.hbm %s2132_s6, 128 }
 0x547   :  { %p1798_p3 = scmp.ne.s32.totalorder %s2132_s6, %s1797_s12  ;;  %p1801_p4 = scmp.lt.u32.totalorder %s1797_s12, %s2132_s6 }
 0x549   :  { %p1803_p5 = pnand %p1801_p4, %p1798_p3 }
 0x54b   :  { %1806 = shalt.err (!%p1803_p5)
}
 0x54c   :  { %1373 = dma.vmem_to_hbm [thread:$0]  %s1371_s9, 128, %s2132_s6, [#allocation15]  }
 0x54d   :  { %1813 = dma.done.wait [#allocation7], 128  }
 0x54e   :  { %1814 = vsyncadd [#allocation7], 4294967168 }
 0x54f   :  { %1815 = dma.done.wait [#allocation15], 128  }
 0x550   :  { %1816 = vsyncadd [#allocation15], 4294967168 }
 0x551   :  { %1380 = vsyncpa [#allocation6], 1 }
 0x552   :  { %1381 = vsyncpa [#allocation9], 1 }
 0x553   :  { %1382 = vsyncpa [#allocation12], 1 }
 0x554   :  { %1383 = vsyncpa [#allocation7], 1 }
 0x555   :  { %1384 = vsyncpa [#allocation15], 1 }

</bundles_post_ra>
